<compile_context>
chip_gen: v5e
topology: v5e:2x2
jax: 0.10.0
libtpu: 0.0.40
codegen_flags: <defaults>
</compile_context>

<pallas_src>
import functools

import jax
import jax.numpy as jnp
from jax import lax
from jax.experimental import pallas as pl
from jax.experimental.pallas import tpu as pltpu

EPS = 1e-5            # nn.BatchNorm1d default
NEG_SLOPE = 0.01      # nn.LeakyReLU default
NUM_BINS = 100        # AutoDiscretization default
NUM_BINS_PAD = 128    # lane-aligned padding of the bin axis
NEG_INF = -1e30


def _vmem_spec():
    return pl.BlockSpec(memory_space=pltpu.MemorySpace.VMEM)


def _smem_spec():
    return pl.BlockSpec(memory_space=pltpu.MemorySpace.SMEM)


def _batchnorm(v, gamma, beta):
    """Training-mode BatchNorm1d over axis 0, single-pass biased variance."""
    mu = jnp.mean(v, axis=0, keepdims=True)
    var = jnp.mean(v * v, axis=0, keepdims=True) - mu * mu
    return (v - mu) * lax.rsqrt(var + EPS) * gamma + beta


def _pool_epilogue(x_new, pw_ref, pb_ref, o_pool_ref, num_atom, batchsize):
    """Fused pre_pooling: Linear + softmax(dim=1) + per-crystal atom sum."""
    h = jnp.dot(x_new.astype(jnp.bfloat16), pw_ref[...],
                preferred_element_type=jnp.float32) + pb_ref[...]
    h = h - jnp.max(h, axis=-1, keepdims=True)
    p = jnp.exp(h)
    s = p * pl.reciprocal(jnp.sum(p, axis=-1, keepdims=True), approx=True)
    rows = [jnp.sum(s[b * num_atom:(b + 1) * num_atom, :], axis=0, keepdims=True)
            for b in range(batchsize)]
    o_pool_ref[...] = jnp.concatenate(rows, axis=0)


# ------------- Kernel 1: (attention-folded) embedding Linear + pool epilogue --
def embed_kernel(x_ref, w_ref, b_ref, pw_ref, pb_ref,
                 o_x_ref, o_pool_ref, *, num_atom, batchsize):
    # AttentionLayer scale is pre-folded into w_ref:  (x*a) @ W == x @ (aᵀ*W)
    x0 = (jnp.dot(x_ref[...].astype(jnp.bfloat16), w_ref[...],
                  preferred_element_type=jnp.float32) + b_ref[...])   # (N, F)
    o_x_ref[...] = x0
    _pool_epilogue(x0, pw_ref, pb_ref, o_pool_ref, num_atom, batchsize)


def embed(atom_fea, emb_w, emb_b, pool_w, pool_b,
          atom_fea_len, num_atom, batchsize):
    n = atom_fea.shape[0]
    kern = functools.partial(embed_kernel, num_atom=num_atom, batchsize=batchsize)
    return pl.pallas_call(
        kern,
        out_shape=(jax.ShapeDtypeStruct((n, atom_fea_len), jnp.float32),
                   jax.ShapeDtypeStruct((batchsize, atom_fea_len), jnp.float32)),
        in_specs=[_vmem_spec()] * 5,
        out_specs=(_vmem_spec(), _vmem_spec()),
        compiler_params=pltpu.CompilerParams(vmem_limit_bytes=32 * 1024 * 1024),
    )(atom_fea, emb_w, emb_b, pool_w, pool_b)


# ------------- Kernel 2: one full CGConv layer + fused pool epilogue ----------
def cgconv_kernel(
        # SMEM
        src_ref, dst_ref, alpha_ref,
        # VMEM inputs
        x_ref, ea_ref,
        w1_ref, b1_ref, w2_ref, b2_ref, lut_ref,
        wi_ref, wj_ref, we_ref, bfc_ref,
        g1_ref, be1_ref, g2_ref, be2_ref,
        pw_ref, pb_ref,
        # outputs
        o_x_ref, o_pool_ref,
        # VMEM scratch
        ai_ref, aj_ref, gp_ref, msg_ref, aggr_ref,
        *, n_edges, num_bins, atom_fea_len, num_atom, batchsize):

    F = atom_fea_len

    # ---- node-level halves of fc_full:  x_i @ W_i == (x @ W_i)[dst] ----------
    x_bf = x_ref[...].astype(jnp.bfloat16)
    ai_ref[...] = jnp.dot(x_bf, wi_ref[...], preferred_element_type=jnp.float32)  # (N, 2F)
    aj_ref[...] = jnp.dot(x_bf, wj_ref[...], preferred_element_type=jnp.float32)  # (N, 2F)

    # ---- per-edge gather of the x_i / x_j contributions (combined 2F row) ----
    def gather_body(i, carry):
        d = dst_ref[i]    # x_i index (aggregation target)
        s = src_ref[i]    # x_j index
        gp_ref[pl.ds(i, 1), :] = ai_ref[pl.ds(d, 1), :] + aj_ref[pl.ds(s, 1), :]
        return carry

    lax.fori_loop(0, n_edges, gather_body, 0)

    # ---- AutoDiscretization on edge_attr (E, 1), bin axis padded to 128 ------
    ea = ea_ref[...]
    v1 = ea * w1_ref[...] + b1_ref[...]               # VPU outer-product (no K=1 MXU)
    v2 = jnp.where(v1 > 0, v1, NEG_SLOPE * v1)        # LeakyReLU
    alpha = alpha_ref[0, 0]
    v3 = (jnp.dot(v2.astype(jnp.bfloat16), w2_ref[...],
                  preferred_element_type=jnp.float32)
          + b2_ref[...] + alpha * v2)
    col = lax.broadcasted_iota(jnp.int32, (1, v3.shape[1]), 1)
    v3 = jnp.where(col < num_bins, v3, NEG_INF)       # mask padded bins
    v3 = v3 - jnp.max(v3, axis=-1, keepdims=True)
    p = jnp.exp(v3)
    v4 = p * pl.reciprocal(jnp.sum(p, axis=-1, keepdims=True), approx=True)
    e_bf = jnp.dot(v4.astype(jnp.bfloat16), lut_ref[...],
                   preferred_element_type=jnp.float32).astype(jnp.bfloat16)

    # ---- edge-level part of fc_full + bn1 + ReLU + gated message -------------
    g = (gp_ref[...]
         + jnp.dot(e_bf, we_ref[...], preferred_element_type=jnp.float32)
         + bfc_ref[...])                               # (E, 2F)
    tg = jnp.maximum(_batchnorm(g, g1_ref[...], be1_ref[...]), 0.0)
    msg_ref[...] = tg[:, :F] * tg[:, F:]               # filter * core  (E, F)

    # ---- scatter-add aggregation at target atoms ------------------------------
    aggr_ref[...] = jnp.zeros_like(aggr_ref)

    def scatter_body(i, carry):
        d = dst_ref[i]
        aggr_ref[pl.ds(d, 1), :] = (aggr_ref[pl.ds(d, 1), :]
                                    + msg_ref[pl.ds(i, 1), :])
        return carry

    lax.fori_loop(0, n_edges, scatter_body, 0)

    # ---- bn2 over atoms + residual + ReLU (update) -----------------------------
    x_new = jnp.maximum(
        x_ref[...] + _batchnorm(aggr_ref[...], g2_ref[...], be2_ref[...]), 0.0)
    o_x_ref[...] = x_new

    # ---- fused pre_pooling epilogue --------------------------------------------
    _pool_epilogue(x_new, pw_ref, pb_ref, o_pool_ref, num_atom, batchsize)


def cgconv(x, src, dst, edge_attr, cp, *, atom_fea_len, nbr_fea_len,
           num_atom, batchsize):
    n = x.shape[0]
    n_edges = edge_attr.shape[0]
    F = atom_fea_len
    kern = functools.partial(cgconv_kernel, n_edges=n_edges, num_bins=NUM_BINS,
                             atom_fea_len=F, num_atom=num_atom,
                             batchsize=batchsize)
    args = (src, dst, cp['alpha'],
            x, edge_attr,
            cp['w1p'], cp['b1p'], cp['w2p'], cp['b2p'], cp['lutp'],
            cp['wi'], cp['wj'], cp['we'], cp['bfc'],
            cp['g1'], cp['be1'], cp['g2'], cp['be2'],
            cp['pw'], cp['pb'])
    in_specs = [_smem_spec()] * 3 + [_vmem_spec()] * (len(args) - 3)
    scratch = [
        pltpu.VMEM((n, 2 * F), jnp.float32),        # ai : x @ W_i   (combined 2F)
        pltpu.VMEM((n, 2 * F), jnp.float32),        # aj : x @ W_j   (combined 2F)
        pltpu.VMEM((n_edges, 2 * F), jnp.float32),  # gathered pre-activation
        pltpu.VMEM((n_edges, F), jnp.float32),      # message
        pltpu.VMEM((n, F), jnp.float32),            # aggregation accumulator
    ]
    flops = int(2 * (2 * n * F * 2 * F
                     + n_edges * NUM_BINS_PAD * NUM_BINS_PAD
                     + n_edges * NUM_BINS_PAD * nbr_fea_len
                     + n_edges * nbr_fea_len * 2 * F
                     + n * F * F))
    cost = pl.CostEstimate(
        flops=flops,
        transcendentals=int(n_edges * NUM_BINS_PAD + n * F),
        bytes_accessed=int(4 * (2 * n * F + batchsize * F + n_edges * (2 * F + 2))
                           + 2 * (NUM_BINS_PAD * (NUM_BINS_PAD + nbr_fea_len)
                                  + (2 * F + nbr_fea_len) * 2 * F + F * F)))
    return pl.pallas_call(
        kern,
        out_shape=(jax.ShapeDtypeStruct((n, F), jnp.float32),
                   jax.ShapeDtypeStruct((batchsize, F), jnp.float32)),
        in_specs=in_specs,
        out_specs=(_vmem_spec(), _vmem_spec()),
        scratch_shapes=scratch,
        compiler_params=pltpu.CompilerParams(vmem_limit_bytes=32 * 1024 * 1024),
        cost_estimate=cost,
    )(*args)


# ------------- Full CGCEncoder forward (performance=True path) ----------------
def cgc_encoder_forward(prep, atom_fea, edge_index, nbr_fea,
                        batchsize, n_conv, atom_fea_len, nbr_fea_len):
    n_atoms = atom_fea.shape[0]
    num_atom = n_atoms // batchsize
    src = edge_index[0].astype(jnp.int32)   # x_j index (source_to_target flow)
    dst = edge_index[1].astype(jnp.int32)   # x_i index / aggregation target

    x, crys = embed(atom_fea, prep['emb_w'], prep['emb_b'],
                    prep['pw'], prep['pb'], atom_fea_len, num_atom, batchsize)
    for li in range(n_conv):
        x, pooled = cgconv(x, src, dst, nbr_fea, prep['convs'][li],
                           atom_fea_len=atom_fea_len, nbr_fea_len=nbr_fea_len,
                           num_atom=num_atom, batchsize=batchsize)
        crys = crys + pooled                # tiny (bsz, F) adds in plain JAX
    return crys


# ------------- deterministic parameter init (torch-style) ---------------------
def init_params(key, orig_atom_fea_len, nbr_fea_len, atom_fea_len, n_conv,
                num_bins=NUM_BINS):
    def lin(k, fan_in, fan_out):
        kw, kb = jax.random.split(k)
        bound = 1.0 / jnp.sqrt(jnp.float32(fan_in))
        w = jax.random.uniform(kw, (fan_in, fan_out), jnp.float32, -bound, bound)
        b = jax.random.uniform(kb, (1, fan_out), jnp.float32, -bound, bound)
        return w, b

    keys = jax.random.split(key, n_conv + 2)
    params = {'attention': jnp.ones((1, orig_atom_fea_len), jnp.float32)}
    params['emb_w'], params['emb_b'] = lin(keys[0], orig_atom_fea_len, atom_fea_len)

    convs = []
    for li in range(n_conv):
        kc = jax.random.split(keys[1 + li], 5)
        w1, b1 = lin(kc[0], 1, num_bins)
        w2, b2 = lin(kc[1], num_bins, num_bins)
        alpha = jax.random.uniform(kc[2], (1, 1), jnp.float32)
        lut = jax.random.uniform(kc[3], (num_bins, nbr_fea_len), jnp.float32)
        wfc, bfc = lin(kc[4], 2 * atom_fea_len + nbr_fea_len, 2 * atom_fea_len)
        convs.append(dict(
            w1=w1, b1=b1, w2=w2, b2=b2, alpha=alpha, lut=lut, wfc=wfc, bfc=bfc,
            g1=jnp.ones((1, 2 * atom_fea_len), jnp.float32),
            be1=jnp.zeros((1, 2 * atom_fea_len), jnp.float32),
            g2=jnp.ones((1, atom_fea_len), jnp.float32),
            be2=jnp.zeros((1, atom_fea_len), jnp.float32)))
    params['convs'] = convs
    params['pool_w'], params['pool_b'] = lin(keys[1 + n_conv], atom_fea_len, atom_fea_len)
    return params


# ------------- kernel-ready params: pad bins to 128, split fc_full, bf16 cast --
def prepare_params(params, atom_fea_len, nbr_fea_len):
    F = atom_fea_len
    kp = NUM_BINS_PAD
    # fold the AttentionLayer elementwise scale into the embedding weight
    emb_w_scaled = params['attention'].reshape(-1, 1) * params['emb_w']
    prep = {
        'emb_w': emb_w_scaled.astype(jnp.bfloat16),
        'emb_b': params['emb_b'],
        'pw': params['pool_w'].astype(jnp.bfloat16),
        'pb': params['pool_b'],
    }
    convs = []
    for p in params['convs']:
        nb = p['w1'].shape[1]
        w1p = jnp.zeros((1, kp), jnp.float32).at[:, :nb].set(p['w1'])
        b1p = jnp.zeros((1, kp), jnp.float32).at[:, :nb].set(p['b1'])
        w2p = (jnp.zeros((kp, kp), jnp.float32).at[:nb, :nb].set(p['w2'])
               .astype(jnp.bfloat16))
        b2p = jnp.zeros((1, kp), jnp.float32).at[:, :nb].set(p['b2'])
        lutp = (jnp.zeros((kp, nbr_fea_len), jnp.float32).at[:nb, :].set(p['lut'])
                .astype(jnp.bfloat16))
        wbf = p['wfc'].astype(jnp.bfloat16)     # (2F+nbr, 2F)
        convs.append(dict(
            alpha=p['alpha'],
            w1p=w1p, b1p=b1p, w2p=w2p, b2p=b2p, lutp=lutp,
            wi=wbf[:F, :],           # x_i rows of fc_full   (F, 2F)
            wj=wbf[F:2 * F, :],      # x_j rows of fc_full   (F, 2F)
            we=wbf[2 * F:, :],       # edge rows of fc_full  (nbr, 2F)
            bfc=p['bfc'],            # (1, 2F)
            g1=p['g1'], be1=p['be1'],
            g2=p['g2'], be2=p['be2'],
            pw=prep['pw'], pb=prep['pb']))
    prep['convs'] = convs
    return prep


if __name__ == "__main__":
    orig_atom_fea_len = 16
    nbr_fea_len = 16
    atom_fea_len = 32
    n_conv = 3
    batchsize = 2
    num_atom = 8
    n_atoms = batchsize * num_atom
    n_edges = 32

    key = jax.random.PRNGKey(0)
    k_param, k_x, k_e, k_src, k_dst = jax.random.split(key, 5)

    params = init_params(k_param, orig_atom_fea_len, nbr_fea_len, atom_fea_len, n_conv)
    prep = prepare_params(params, atom_fea_len, nbr_fea_len)

    atom_fea = jax.random.normal(k_x, (n_atoms, orig_atom_fea_len), jnp.float32)
    nbr_fea = jax.random.normal(k_e, (n_edges, 1), jnp.float32)   # scalar edge attr

    # random edges, kept inside each crystal (atoms ordered crystal-contiguously)
    src = jax.random.randint(k_src, (n_edges,), 0, num_atom)
    dst = jax.random.randint(k_dst, (n_edges,), 0, num_atom)
    offs = jnp.repeat(jnp.arange(batchsize), n_edges // batchsize) * num_atom
    edge_index = jnp.stack([src + offs, dst + offs], axis=0)      # (2, E)

    out = cgc_encoder_forward(prep, atom_fea, edge_index, nbr_fea,
                              batchsize, n_conv, atom_fea_len, nbr_fea_len)
    out = jax.block_until_ready(out)
    assert out.shape == (batchsize, atom_fea_len)
    assert bool(jnp.all(jnp.isfinite(out)))
    print("KERNEL_OK")
</pallas_src>

<mosaic_0001>
module attributes {stable_mosaic.version = 11 : i64} {
  func.func @embed_kernel(%arg0: memref<16x16xf32, #tpu.memory_space<vmem>>, %arg1: memref<16x32xbf16, #tpu.memory_space<vmem>>, %arg2: memref<1x32xf32, #tpu.memory_space<vmem>>, %arg3: memref<32x32xbf16, #tpu.memory_space<vmem>>, %arg4: memref<1x32xf32, #tpu.memory_space<vmem>>, %arg5: memref<16x32xf32, #tpu.memory_space<vmem>>, %arg6: memref<2x32xf32, #tpu.memory_space<vmem>>) attributes {dimension_semantics = [], scalar_prefetch = 0 : i64, scratch_operands = 0 : i64, tpu.core_type = #tpu.core_type<tc>} {
    %c0 = arith.constant 0 : index
    %c0_0 = arith.constant 0 : index
    %0 = vector.load %arg0[%c0, %c0_0] : memref<16x16xf32, #tpu.memory_space<vmem>>, vector<16x16xf32>
    %1 = arith.truncf %0 : vector<16x16xf32> to vector<16x16xbf16>
    %c0_1 = arith.constant 0 : index
    %c0_2 = arith.constant 0 : index
    %2 = vector.load %arg1[%c0_1, %c0_2] : memref<16x32xbf16, #tpu.memory_space<vmem>>, vector<16x32xbf16>
    %cst = arith.constant dense<0.000000e+00> : vector<16x32xf32>
    %3 = tpu.matmul %1, %2, %cst {dimension_numbers = #tpu.dot_dimension_numbers<[1], [0], [0], [1], [0, 0, 1, 1], [], []>} : vector<16x16xbf16>, vector<16x32xbf16>, vector<16x32xf32> -> vector<16x32xf32>
    %c0_3 = arith.constant 0 : index
    %c0_4 = arith.constant 0 : index
    %4 = vector.load %arg2[%c0_3, %c0_4] : memref<1x32xf32, #tpu.memory_space<vmem>>, vector<1x32xf32>
    %5 = vector.broadcast %4 : vector<1x32xf32> to vector<16x32xf32>
    %6 = arith.addf %3, %5 : vector<16x32xf32>
    %c0_5 = arith.constant 0 : index
    %c0_6 = arith.constant 0 : index
    %7 = vector.load %arg5[%c0_5, %c0_6] : memref<16x32xf32, #tpu.memory_space<vmem>>, vector<16x32xf32>
    tpu.vector_store %arg5[%c0_5, %c0_6], %6 {strides = array<i32>} : memref<16x32xf32, #tpu.memory_space<vmem>>, vector<16x32xf32>,
    %8 = arith.truncf %6 : vector<16x32xf32> to vector<16x32xbf16>
    %c0_7 = arith.constant 0 : index
    %c0_8 = arith.constant 0 : index
    %9 = vector.load %arg3[%c0_7, %c0_8] : memref<32x32xbf16, #tpu.memory_space<vmem>>, vector<32x32xbf16>
    %cst_9 = arith.constant dense<0.000000e+00> : vector<16x32xf32>
    %10 = tpu.matmul %8, %9, %cst_9 {dimension_numbers = #tpu.dot_dimension_numbers<[1], [0], [0], [1], [0, 0, 1, 1], [], []>} : vector<16x32xbf16>, vector<32x32xbf16>, vector<16x32xf32> -> vector<16x32xf32>
    %c0_10 = arith.constant 0 : index
    %c0_11 = arith.constant 0 : index
    %11 = vector.load %arg4[%c0_10, %c0_11] : memref<1x32xf32, #tpu.memory_space<vmem>>, vector<1x32xf32>
    %12 = vector.broadcast %11 : vector<1x32xf32> to vector<16x32xf32>
    %13 = arith.addf %10, %12 : vector<16x32xf32>
    %cst_12 = arith.constant dense<0xFF800000> : vector<16xf32>
    %14 = vector.multi_reduction <maximumf>, %13, %cst_12 [1] : vector<16x32xf32> to vector<16xf32>
    %15 = vector.shape_cast %14 : vector<16xf32> to vector<16x1xf32>
    %16 = vector.broadcast %15 : vector<16x1xf32> to vector<16x32xf32>
    %17 = arith.subf %13, %16 : vector<16x32xf32>
    %18 = math.exp %17 : vector<16x32xf32>
    %cst_13 = arith.constant dense<0.000000e+00> : vector<16xf32>
    %19 = vector.multi_reduction <add>, %18, %cst_13 [1] : vector<16x32xf32> to vector<16xf32>
    %20 = vector.shape_cast %19 : vector<16xf32> to vector<16x1xf32>
    %21 = tpu.reciprocal %20 {approx = true} : vector<16x1xf32> -> vector<16x1xf32>
    %22 = vector.broadcast %21 : vector<16x1xf32> to vector<16x32xf32>
    %23 = arith.mulf %18, %22 : vector<16x32xf32>
    %24 = vector.extract_strided_slice %23 {offsets = [0, 0], sizes = [8, 32], strides = [1, 1]} : vector<16x32xf32> to vector<8x32xf32>
    %cst_14 = arith.constant dense<0.000000e+00> : vector<32xf32>
    %25 = vector.multi_reduction <add>, %24, %cst_14 [0] : vector<8x32xf32> to vector<32xf32>
    %26 = vector.shape_cast %25 : vector<32xf32> to vector<1x32xf32>
    %27 = vector.extract_strided_slice %23 {offsets = [8, 0], sizes = [8, 32], strides = [1, 1]} : vector<16x32xf32> to vector<8x32xf32>
    %cst_15 = arith.constant dense<0.000000e+00> : vector<32xf32>
    %28 = vector.multi_reduction <add>, %27, %cst_15 [0] : vector<8x32xf32> to vector<32xf32>
    %29 = vector.shape_cast %28 : vector<32xf32> to vector<1x32xf32>
    %30 = tpu.concatenate %26, %29 in 0 : vector<1x32xf32>, vector<1x32xf32> -> vector<2x32xf32>
    %c0_16 = arith.constant 0 : index
    %c0_17 = arith.constant 0 : index
    %31 = vector.load %arg6[%c0_16, %c0_17] : memref<2x32xf32, #tpu.memory_space<vmem>>, vector<2x32xf32>
    tpu.vector_store %arg6[%c0_16, %c0_17], %30 {strides = array<i32>} : memref<2x32xf32, #tpu.memory_space<vmem>>, vector<2x32xf32>,
    return
  }
}

</mosaic_0001>

<bundles_post_ra>
// kernel: tpu_custom_call.1
= control target key start
LH: loop header
LB: loop body
LE: loop exit
PB: predicated region body
PF: predicated region fallthrough
CT: control target
= control target key end

     0   :  { %12 = vsyncpa [#allocation3], 0  ;;  %s466_s0 = inlined_call_operand.hbm [shape: f32[16,16], index: 0, kind: input, shape index: {}]   ;;  %s467_s1 = inlined_call_operand.hbm [shape: bf16[16,32], index: 1, kind: input, shape index: {}]   ;;  %s468_s2 = inlined_call_operand.vmem [shape: f32[1,32], index: 2, kind: input, shape index: {}]   ;;  %s469_s3 = inlined_call_operand.hbm [shape: bf16[32,32], index: 3, kind: input, shape index: {}]   ;;  %s470_s4 = inlined_call_operand.vmem [shape: f32[1,32], index: 4, kind: input, shape index: {}]   ;;  %s471_s5 = inlined_call_operand.hbm [shape: f32[16,32], index: 5, kind: output, shape index: {0}]   ;;  %s472_s6 = inlined_call_operand.hbm [shape: f32[2,32], index: 6, kind: output, shape index: {1}]  }
   0x1   :  { %13 = vsyncpa [#allocation6], 0 }
   0x2   :  { %14 = vsyncpa [#allocation4], 0  ;;  %s33_s23 = sshll.u32 %s467_s1, 4  ;;  %s34_s23 = int_to_ptr.hbm [resolvable:$true] %s33_s23 }
   0x3   :  { %15 = vsyncpa [#allocation10], 0  ;;  %s386_s24 = smov [#allocation5]   ;;  %s20_s28 = sshll.u32 %s466_s0, 4  ;;  %s21_s28 = int_to_ptr.hbm [resolvable:$true] %s20_s28 }
   0x4   :  { %s35_s25 = sshll.u32 %s386_s24, 4  ;;  %s387_s29 = smov 64   ;;  %s36_s25 = int_to_ptr.vmem [resolvable:$true] %s35_s25 }
   0x5   :  { %s388_s30 = smov 4   ;;  %s389_s7 = smov [#allocation2]  }
   0x6   :  { %41 = dma.hbm_to_vmem [thread:$0]  %s34_s23, 128, %s36_s25, [#allocation6], %s387_s29, %s387_s29, %s388_s30  }
   0x7   :  { %s22_s8 = sshll.u32 %s389_s7, 4  ;;  %s390_s9 = smov 128   ;;  %s23_s8 = int_to_ptr.vmem [resolvable:$true] %s22_s8 }
   0x8   :  { %s391_s10 = smov 8   ;;  %s48_s12 = sshll.u32 %s469_s3, 4  ;;  %s49_s12 = int_to_ptr.hbm [resolvable:$true] %s48_s12 }
   0x9   :  { %28 = dma.hbm_to_vmem [thread:$0]  %s21_s28, 256, %s23_s8, [#allocation3], %s390_s9, %s390_s9, %s391_s10  }
   0xa   :  { %s392_s13 = smov [#allocation7]  }
   0xb   :  { %s50_s0 = sshll.u32 %s392_s13, 4  ;;  %s51_s0 = int_to_ptr.vmem [resolvable:$true] %s50_s0 }
   0xc   :  { %56 = dma.hbm_to_vmem [thread:$0]  %s49_s12, 256, %s51_s0, [#allocation6], %s387_s29, %s387_s29, %s388_s30  }
   0xd   :  { %378 = dma.done.wait [#allocation3], 256  }
   0xe   :  { %379 = vsyncadd [#allocation3], 4294967040 }
   0xf   :  { %380 = dma.done.wait [#allocation6], 384  }
  0x10   :  { %381 = vsyncadd [#allocation6], 4294966912  ;;  %v236_v0 = vld [vmem:[#allocation5] sm:$0xff]  ;;  %v72_v1 = vld [vmem:[#allocation2] sm:$0xff]  ;;  %vm87_vm0 = vcmask 130048   ;;  %vm105_vm1 = vcmask 261120  }
  0x11   :  { %v73_v2 = vld [vmem:[#allocation2 + $0x8] sm:$0xff]  ;;  %98 = vmatpush.bf16.msra.mxu0 %v236_v0  ;;  %v238_v4 = vld [vmem:[#allocation7 + $0x8] sm:$0xff]  ;;  %v237_v5 = vld [vmem:[#allocation7] sm:$0xff]  ;;  %s192_s17 = sshll.u32 %s471_s5, 4  ;;  %s393_s18 = smov [#allocation8]   ;;  %vm182_vm2 = vcmask 1040384   ;;  %s193_s17 = int_to_ptr.hbm [resolvable:$true] %s192_s17 }
  0x12   :  { %v74_v3 = vpack.c.bf16 %v73_v2, %v72_v1  ;;  %138 = vmatpush.bf16.msra.mxu1 %v238_v4  ;;  %v248_v6 = vld [vmem:[%s468_s2] ss:$0 sm:$0xff]  ;;  %s190_s19 = sshll.u32 %s393_s18, 4  ;;  %s394_s5 = smov [#allocation9]   ;;  %vm184_vm3 = vcmask 254976   ;;  %s191_s19 = int_to_ptr.vmem [resolvable:$true] %s190_s19 }
  0x13   :  { %v249_v12 = vld [vmem:[%s470_s4] ss:$0 sm:$0xff]  ;;  %s204_s20 = sshll.u32 %s394_s5, 4  ;;  %s206_s23 = sshll.u32 %s472_s6, 4  ;;  %s205_s20 = int_to_ptr.vmem [resolvable:$true] %s204_s20  ;;  %s207_s23 = int_to_ptr.hbm [resolvable:$true] %s206_s23 }
  0x14   :  { %226 = vmatmul.msk.bf16.vlgmr.msra.gmra.mxu0 %vm87_vm0, %v74_v3 }
  0x16   :  { %139 = vmatpush.bf16.msra.mxu1 %v237_v5 }
  0x91   :  { %v100_v7 = vpop.f32.mrf.mxu0 }
  0x92   :  { %v101_v8 = vadd.f32 %v248_v6, %v100_v7 }
  0x94   :  { %106 = vst.msk [vmem:[#allocation8] sm:$0xff] %vm105_vm1, %v101_v8 }
  0x99   :  { %v102_v9 = vpop.f32.mrf.mxu0 }
  0x9a   :  { %v103_v10 = vadd.f32 %v248_v6, %v102_v9 }
  0x9c   :  { %107 = vst.msk [vmem:[#allocation8 + $0x8] sm:$0xff] %vm105_vm1, %v103_v10  ;;  %v108_v11 = vpack.c.bf16 %v103_v10, %v101_v8 }
  0x9d   :  { %198 = dma.vmem_to_hbm [thread:$0]  %s191_s19, 256, %s193_s17, [#allocation4], %s390_s9, %s390_s9, %s391_s10  }
  0x9e   :  { %235 = vmatmul.msk.bf16.vlgmr.msra.gmra.mxu1 %vm105_vm1, %v108_v11 }
 0x11b   :  { %v141_v13 = vpop.f32.mrf.mxu1 }
 0x11c   :  { %v142_v14 = vadd.f32 %v249_v12, %v141_v13 }
 0x11e   :  { %v146_v15 = vsel %vm105_vm1, %v142_v14, -inf }
 0x11f   :  { %147 = vmax.xlane.f32.xlu0 %v146_v15 }
 0x123   :  { %v143_v16 = vpop.f32.mrf.mxu1 }
 0x124   :  { %v144_v17 = vadd.f32 %v249_v12, %v143_v16 }
 0x126   :  { %v149_v18 = vsel %vm105_vm1, %v144_v17, -inf }
 0x127   :  { %150 = vmax.xlane.f32.xlu0 %v149_v18 }
 0x192   :  { %v148_v19 = vpop.xlane.xlu0 %147 }
 0x193   :  { %v152_v20 = vsub.f32 %v142_v14, %v148_v19 }
 0x195   :  { %v154_v21 = vmul.f32 1.442695, %v152_v20 }
 0x197   :  { %250 = vpow2.f32 %v154_v21 }
 0x19a   :  { %v151_v22 = vpop.xlane.xlu0 %150 }
 0x19b   :  { %v153_v23 = vsub.f32 %v144_v17, %v151_v22 }
 0x19d   :  { %v251_v24 = vpop.eup %250  ;;  %v156_v25 = vmul.f32 1.442695, %v153_v23 }
 0x19e   :  { %v158_v26 = vsel %vm105_vm1, %v251_v24, 0.0 }
 0x19f   :  { %252 = vpow2.f32 %v156_v25  ;;  %159 = vadd.xlane.f32.xlu1 %v158_v26 }
 0x1a5   :  { %v253_v27 = vpop.eup %252 }
 0x1a6   :  { %v161_v28 = vsel %vm105_vm1, %v253_v27, 0.0 }
 0x1a7   :  { %162 = vadd.xlane.f32.xlu1 %v161_v28 }
 0x212   :  { %v160_v29 = vpop.xlane.xlu1 %159 }
 0x213   :  { %254 = vrcp.f32 %v160_v29 }
 0x219   :  { %v255_v30 = vpop.eup %254 }
 0x21a   :  { %v166_v31 = vmul.f32 %v255_v30, %v251_v24  ;;  %v163_v32 = vpop.xlane.xlu1 %162 }
 0x21b   :  { %256 = vrcp.f32 %v163_v32 }
 0x21c   :  { %v168_v33 = vsel %vm105_vm1, %v166_v31, 0.0 }
 0x21d   :  { %v169_v34 = vrot.slane %v168_v33, 4 }
 0x21f   :  { %v170_v35 = vadd.f32 %v169_v34, %v168_v33 }
 0x221   :  { %v257_v36 = vpop.eup %256  ;;  %v171_v38 = vrot.slane %v170_v35, 2 }
 0x222   :  { %v167_v37 = vmul.f32 %v257_v36, %v253_v27 }
 0x223   :  { %v172_v42 = vadd.f32 %v171_v38, %v170_v35 }
 0x224   :  { %v175_v39 = vsel %vm105_vm1, %v167_v37, 0.0 }
 0x225   :  { %v176_v40 = vrot.slane %v175_v39, 4  ;;  %v173_v45 = vrot.slane %v172_v42, 1 }
 0x227   :  { %v177_v41 = vadd.f32 %v176_v40, %v175_v39  ;;  %v174_v47 = vadd.f32 %v173_v45, %v172_v42 }
 0x229   :  { %v178_v43 = vrot.slane %v177_v41, 2 }
 0x22b   :  { %v179_v44 = vadd.f32 %v178_v43, %v177_v41 }
 0x22d   :  { %v180_v46 = vrot.slane %v179_v44, 1 }
 0x22f   :  { %v181_v48 = vadd.f32 %v180_v46, %v179_v44 }
 0x231   :  { %v183_v49 = vsel %vm182_vm2, %v174_v47, %v181_v48 }
 0x232   :  { %185 = vst.msk [vmem:[#allocation9] sm:$0x3] %vm184_vm3, %v183_v49 }
 0x233   :  { %209 = dma.vmem_to_hbm [thread:$0]  %s205_s20, 32, %s207_s23, [#allocation10]  }
 0x234   :  { %382 = dma.done.wait [#allocation4], 256  }
 0x235   :  { %383 = vsyncadd [#allocation4], 4294967040 }
 0x236   :  { %384 = dma.done.wait [#allocation10], 32  }
 0x237   :  { %385 = vsyncadd [#allocation10], 4294967264 }
 0x238   :  { %218 = vsyncpa [#allocation3], 1 }
 0x239   :  { %219 = vsyncpa [#allocation6], 1 }
 0x23a   :  { %220 = vsyncpa [#allocation4], 1 }
 0x23b   :  { %221 = vsyncpa [#allocation10], 1 }

</bundles_post_ra>
